<compile_context>
chip_gen: v7x
topology: tpu7x:2x2x1
jax: 0.10.0
libtpu: 0.0.40
codegen_flags: <defaults>
</compile_context>

<pallas_src>
import functools

import jax
import jax.numpy as jnp
from jax.experimental import pallas as pl
from jax.experimental.pallas import tpu as pltpu


def _round_up(x, m):
    return (x + m - 1) // m * m


def _tgt_attn_kernel(q_ref, kv_ref, w_ref, b_ref, out_ref, *, dim, h, qrows):
    """Single-invocation kernel; all operands resident in VMEM.

    q_ref  : (1, qrows)        query, zero-padded from 10 -> qrows features
    kv_ref : (nwords, 2*dim)   concat([key, value], axis=1)
    w_ref  : (qrows+4*dim, 2*dim) packed weight slab:
               rows [0, qrows)            : Wq  (folded tgt_linear o linears[0]), cols [0, dim)
               rows [qrows, qrows+dim)    : W3  (linears[3].T),                   cols [0, dim)
               rows [qrows+dim, qrows+2d) : g   head-grouping matrix,             cols [0, h)
               rows [qrows+2d, qrows+4d)  : blockdiag(W1.T, W2.T)                 cols [0, 2*dim)
    b_ref  : (1, 4*dim)        [bq | b_kv | b3]   (lane-dense, 128 wide for dim=32)
    out_ref: (nwords, dim)
    """
    W = w_ref[...]
    b = b_ref[...]

    Wq = W[0:qrows, 0:dim]                              # (qrows, dim)
    W3 = W[qrows:qrows + dim, 0:dim]                    # (dim, dim)
    g = W[qrows + dim:qrows + 2 * dim, 0:h]             # (dim, h)
    Wkv = W[qrows + 2 * dim:qrows + 4 * dim, :]         # (2*dim, 2*dim)

    bq = b[:, 0:dim]                                    # (1, dim)
    bkv = b[:, dim:3 * dim]                             # (1, 2*dim)
    b3 = b[:, 3 * dim:4 * dim]                          # (1, dim)

    # --- projections (MXU) ---
    q = jnp.dot(q_ref[...], Wq, preferred_element_type=jnp.float32) + bq      # (1, dim)
    kv = jnp.dot(kv_ref[...], Wkv, preferred_element_type=jnp.float32) + bkv  # (nwords, 2*dim)
    k = kv[:, 0:dim]                                                          # (nwords, dim)
    v = kv[:, dim:2 * dim]                                                    # (nwords, dim)

    # --- per-head scores: scores[w, hh] = sum_{d in head hh} q[0, d] * k[w, d]
    # g is the (dim, h) head-grouping matrix, so per-head dot products become
    # one small MXU matmul (no in-kernel reshapes/transposes of data).
    prod = k * q                                                              # (nwords, dim)
    scores = jnp.dot(prod, g, preferred_element_type=jnp.float32)             # (nwords, h)

    # --- softmax over words (dim=2 in the PyTorch code == the word axis) ---
    m = jnp.max(scores, axis=0, keepdims=True)
    e = jnp.exp(scores - m)
    denom = jnp.sum(e, axis=0, keepdims=True)
    # approx=False keeps bit-level agreement with the f32 reference;
    # approx=True would move this onto the EUP (effectively free) at ~1e-4 rel err.
    p = e * pl.reciprocal(denom, approx=False)                                # (nwords, h)

    # --- x[w, hh*d_k + d] = p[w, hh] * v[w, hh*d_k + d] ---
    p_full = jnp.dot(p, g.T, preferred_element_type=jnp.float32)              # (nwords, dim)
    x = p_full * v

    # --- output projection (linears[-1]) ---
    out_ref[...] = jnp.dot(x, W3, preferred_element_type=jnp.float32) + b3


def tgt_attn_forward(query, key, value, params, h):
    nwords, dim = key.shape
    d_k = dim // h
    in_f = query.shape[1]                      # 10
    qrows = _round_up(in_f, 8)                 # sublane-aligned query width
    L = 2 * dim                                # weight-slab lane width

    f32 = jnp.float32

    # Fold the two serial q projections: q = query @ Wq + bq  (exact).
    Wq = (params["Wtgt"].T @ params["W0"].T).astype(f32)                 # (in_f, dim)
    bq = (params["btgt"] @ params["W0"].T + params["b0"]).astype(f32)    # (dim,)

    # Fuse K/V projections into one block-diagonal matmul.
    Wkv = jnp.zeros((2 * dim, 2 * dim), f32)
    Wkv = Wkv.at[0:dim, 0:dim].set(params["W1"].T.astype(f32))
    Wkv = Wkv.at[dim:, dim:].set(params["W2"].T.astype(f32))
    bkv = jnp.concatenate([params["b1"], params["b2"]]).astype(f32)      # (2*dim,)

    # Head-grouping matrix (dim, h): g[d, hh] = 1 iff feature d belongs to head hh.
    g = (jnp.arange(dim)[:, None] // d_k == jnp.arange(h)[None, :]).astype(f32)

    def pad_to(a, rows, cols):
        return jnp.pad(a, ((0, rows - a.shape[0]), (0, cols - a.shape[1])))

    # Packed weight slab: (qrows + 4*dim, 2*dim); all segment row offsets are
    # multiples of 8 (sublane-aligned static slices in the kernel).
    W_all = jnp.concatenate(
        [
            pad_to(Wq, qrows, L),
            pad_to(params["W3"].T.astype(f32), dim, L),
            pad_to(g, dim, L),
            Wkv,
        ],
        axis=0,
    )
    # Packed, lane-dense bias row: (1, 4*dim) == (1, 128) for dim=32.
    b_all = jnp.concatenate([bq, bkv, params["b3"].astype(f32)])[None, :]

    q_pad = jnp.pad(query.astype(f32), ((0, 0), (0, qrows - in_f)))      # (1, qrows)
    kv_in = jnp.concatenate([key, value], axis=1).astype(f32)            # (nwords, 2*dim)

    kernel = functools.partial(_tgt_attn_kernel, dim=dim, h=h, qrows=qrows)
    args = (q_pad, kv_in, W_all, b_all)

    return pl.pallas_call(
        kernel,
        out_shape=jax.ShapeDtypeStruct((nwords, dim), jnp.float32),
        in_specs=[pl.BlockSpec(memory_space=pltpu.MemorySpace.VMEM)] * len(args),
        out_specs=pl.BlockSpec(memory_space=pltpu.MemorySpace.VMEM),
    )(*args)


def ref_forward(query, key, value, params, h):
    """Pure-JAX transcription of the PyTorch forward, for verification."""
    nwords, dim = key.shape
    d_k = dim // h
    q = query @ params["Wtgt"].T + params["btgt"]
    q = (q @ params["W0"].T + params["b0"]).reshape(-1, h, d_k).transpose(1, 0, 2)       # (h,1,d_k)
    k = (key @ params["W1"].T + params["b1"]).reshape(nwords, 1, h, d_k).transpose(0, 2, 1, 3)
    v = (value @ params["W2"].T + params["b2"]).reshape(nwords, 1, h, d_k).transpose(0, 2, 1, 3)
    k = jnp.squeeze(k, 2).transpose(1, 0, 2).transpose(0, 2, 1)                           # (h,d_k,nwords)
    scores = jnp.einsum("hqd,hdw->hqw", q, k)                                             # (h,1,nwords)
    p = jax.nn.softmax(scores, axis=2).transpose(0, 2, 1)                                 # (h,nwords,1)
    v = jnp.squeeze(v, 2).transpose(1, 0, 2)                                              # (h,nwords,d_k)
    x = p * v
    x = x.transpose(1, 0, 2).reshape(nwords, h * d_k)
    return x @ params["W3"].T + params["b3"]


if __name__ == "__main__":
    h, dim, nwords = 4, 32, 8

    root = jax.random.PRNGKey(0)
    ks = jax.random.split(root, 16)

    query = jax.random.normal(ks[0], (1, 10), jnp.float32)
    key_in = jax.random.normal(ks[1], (nwords, dim), jnp.float32)
    value_in = jax.random.normal(ks[2], (nwords, dim), jnp.float32)

    def init_linear(kw, kb, out_f, in_f):
        bound = 1.0 / (in_f ** 0.5)
        W = jax.random.uniform(kw, (out_f, in_f), jnp.float32, -bound, bound)
        b = jax.random.uniform(kb, (out_f,), jnp.float32, -bound, bound)
        return W, b

    params = {}
    params["Wtgt"], params["btgt"] = init_linear(ks[3], ks[4], dim, 10)
    params["W0"], params["b0"] = init_linear(ks[5], ks[6], dim, dim)
    params["W1"], params["b1"] = init_linear(ks[7], ks[8], dim, dim)
    params["W2"], params["b2"] = init_linear(ks[9], ks[10], dim, dim)
    params["W3"], params["b3"] = init_linear(ks[11], ks[12], dim, dim)

    out = tgt_attn_forward(query, key_in, value_in, params, h)
    out = jax.block_until_ready(out)

    ref = ref_forward(query, key_in, value_in, params, h)
    assert out.shape == (nwords, dim)
    # Folded q-projection re-associates f32 sums -> allow a small tolerance.
    assert jnp.allclose(out, ref, atol=1e-4, rtol=1e-4), "mismatch vs reference"

    print("KERNEL_OK")
</pallas_src>

<mosaic_0001>
module attributes {stable_mosaic.version = 11 : i64} {
  func.func @_tgt_attn_kernel(%arg0: memref<1x16xf32, #tpu.memory_space<vmem>>, %arg1: memref<8x64xf32, #tpu.memory_space<vmem>>, %arg2: memref<144x64xf32, #tpu.memory_space<vmem>>, %arg3: memref<1x128xf32, #tpu.memory_space<vmem>>, %arg4: memref<8x32xf32, #tpu.memory_space<vmem>>) attributes {dimension_semantics = [], scalar_prefetch = 0 : i64, scratch_operands = 0 : i64, tpu.core_type = #tpu.core_type<tc>} {
    %c0 = arith.constant 0 : index
    %c0_0 = arith.constant 0 : index
    %0 = vector.load %arg2[%c0, %c0_0] : memref<144x64xf32, #tpu.memory_space<vmem>>, vector<144x64xf32>
    %c0_1 = arith.constant 0 : index
    %c0_2 = arith.constant 0 : index
    %1 = vector.load %arg3[%c0_1, %c0_2] : memref<1x128xf32, #tpu.memory_space<vmem>>, vector<1x128xf32>
    %2 = vector.extract_strided_slice %0 {offsets = [0, 0], sizes = [16, 32], strides = [1, 1]} : vector<144x64xf32> to vector<16x32xf32>
    %3 = vector.extract_strided_slice %0 {offsets = [16, 0], sizes = [32, 32], strides = [1, 1]} : vector<144x64xf32> to vector<32x32xf32>
    %4 = vector.extract_strided_slice %0 {offsets = [48, 0], sizes = [32, 4], strides = [1, 1]} : vector<144x64xf32> to vector<32x4xf32>
    %5 = vector.extract_strided_slice %0 {offsets = [80, 0], sizes = [64, 64], strides = [1, 1]} : vector<144x64xf32> to vector<64x64xf32>
    %6 = vector.extract_strided_slice %1 {offsets = [0, 0], sizes = [1, 32], strides = [1, 1]} : vector<1x128xf32> to vector<1x32xf32>
    %7 = vector.extract_strided_slice %1 {offsets = [0, 32], sizes = [1, 64], strides = [1, 1]} : vector<1x128xf32> to vector<1x64xf32>
    %8 = vector.extract_strided_slice %1 {offsets = [0, 96], sizes = [1, 32], strides = [1, 1]} : vector<1x128xf32> to vector<1x32xf32>
    %c0_3 = arith.constant 0 : index
    %c0_4 = arith.constant 0 : index
    %9 = vector.load %arg0[%c0_3, %c0_4] : memref<1x16xf32, #tpu.memory_space<vmem>>, vector<1x16xf32>
    %cst = arith.constant dense<0.000000e+00> : vector<1x32xf32>
    %10 = tpu.matmul %9, %2, %cst {dimension_numbers = #tpu.dot_dimension_numbers<[1], [0], [0], [1], [0, 0, 1, 1], [], []>} : vector<1x16xf32>, vector<16x32xf32>, vector<1x32xf32> -> vector<1x32xf32>
    %11 = arith.addf %10, %6 : vector<1x32xf32>
    %c0_5 = arith.constant 0 : index
    %c0_6 = arith.constant 0 : index
    %12 = vector.load %arg1[%c0_5, %c0_6] : memref<8x64xf32, #tpu.memory_space<vmem>>, vector<8x64xf32>
    %cst_7 = arith.constant dense<0.000000e+00> : vector<8x64xf32>
    %13 = tpu.matmul %12, %5, %cst_7 {dimension_numbers = #tpu.dot_dimension_numbers<[1], [0], [0], [1], [0, 0, 1, 1], [], []>} : vector<8x64xf32>, vector<64x64xf32>, vector<8x64xf32> -> vector<8x64xf32>
    %14 = vector.broadcast %7 : vector<1x64xf32> to vector<8x64xf32>
    %15 = arith.addf %13, %14 : vector<8x64xf32>
    %16 = vector.extract_strided_slice %15 {offsets = [0, 0], sizes = [8, 32], strides = [1, 1]} : vector<8x64xf32> to vector<8x32xf32>
    %17 = vector.extract_strided_slice %15 {offsets = [0, 32], sizes = [8, 32], strides = [1, 1]} : vector<8x64xf32> to vector<8x32xf32>
    %18 = vector.broadcast %11 : vector<1x32xf32> to vector<8x32xf32>
    %19 = arith.mulf %16, %18 : vector<8x32xf32>
    %cst_8 = arith.constant dense<0.000000e+00> : vector<8x4xf32>
    %20 = tpu.matmul %19, %4, %cst_8 {dimension_numbers = #tpu.dot_dimension_numbers<[1], [0], [0], [1], [0, 0, 1, 1], [], []>} : vector<8x32xf32>, vector<32x4xf32>, vector<8x4xf32> -> vector<8x4xf32>
    %cst_9 = arith.constant dense<0xFF800000> : vector<4xf32>
    %21 = vector.multi_reduction <maximumf>, %20, %cst_9 [0] : vector<8x4xf32> to vector<4xf32>
    %22 = vector.shape_cast %21 : vector<4xf32> to vector<1x4xf32>
    %23 = vector.broadcast %22 : vector<1x4xf32> to vector<8x4xf32>
    %24 = arith.subf %20, %23 : vector<8x4xf32>
    %25 = math.exp %24 : vector<8x4xf32>
    %cst_10 = arith.constant dense<0.000000e+00> : vector<4xf32>
    %26 = vector.multi_reduction <add>, %25, %cst_10 [0] : vector<8x4xf32> to vector<4xf32>
    %27 = vector.shape_cast %26 : vector<4xf32> to vector<1x4xf32>
    %28 = tpu.reciprocal %27 : vector<1x4xf32> -> vector<1x4xf32>
    %29 = vector.broadcast %28 : vector<1x4xf32> to vector<8x4xf32>
    %30 = arith.mulf %25, %29 : vector<8x4xf32>
    %31 = tpu.transpose %4, [1, 0] : vector<32x4xf32> -> vector<4x32xf32>
    %cst_11 = arith.constant dense<0.000000e+00> : vector<8x32xf32>
    %32 = tpu.matmul %30, %31, %cst_11 {dimension_numbers = #tpu.dot_dimension_numbers<[1], [0], [0], [1], [0, 0, 1, 1], [], []>} : vector<8x4xf32>, vector<4x32xf32>, vector<8x32xf32> -> vector<8x32xf32>
    %33 = arith.mulf %32, %17 : vector<8x32xf32>
    %cst_12 = arith.constant dense<0.000000e+00> : vector<8x32xf32>
    %34 = tpu.matmul %33, %3, %cst_12 {dimension_numbers = #tpu.dot_dimension_numbers<[1], [0], [0], [1], [0, 0, 1, 1], [], []>} : vector<8x32xf32>, vector<32x32xf32>, vector<8x32xf32> -> vector<8x32xf32>
    %35 = vector.broadcast %8 : vector<1x32xf32> to vector<8x32xf32>
    %36 = arith.addf %34, %35 : vector<8x32xf32>
    %c0_13 = arith.constant 0 : index
    %c0_14 = arith.constant 0 : index
    %37 = vector.load %arg4[%c0_13, %c0_14] : memref<8x32xf32, #tpu.memory_space<vmem>>, vector<8x32xf32>
    tpu.vector_store %arg4[%c0_13, %c0_14], %36 {strides = array<i32>} : memref<8x32xf32, #tpu.memory_space<vmem>>, vector<8x32xf32>,
    return
  }
}

</mosaic_0001>

<bundles_post_ra>
// kernel: tpu_custom_call.1
= control target key start
LH: loop header
LB: loop body
LE: loop exit
PB: predicated region body
PF: predicated region fallthrough
CT: control target
= control target key end

     0   :  { %v114_v3 = vlaneseq  ;;  %v639_v4 = vmov 0.0|0.0   ;;  %vm640_vm0 = vmmov 0   ;;  %v641_v9 = vmov 0.0   ;;  %s775_s0 = inlined_call_operand.vmem [shape: f32[1,16], index: 0, kind: input, shape index: {}]   ;;  %s776_s1 = inlined_call_operand.vmem [shape: f32[8,64], index: 1, kind: input, shape index: {}]   ;;  %s777_s2 = inlined_call_operand.vmem [shape: f32[144,64], index: 2, kind: input, shape index: {}]   ;;  %s778_s3 = inlined_call_operand.vmem [shape: f32[1,128], index: 3, kind: input, shape index: {}]   ;;  %s779_s4 = inlined_call_operand.hbm [shape: f32[8,32], index: 4, kind: output, shape index: {}]  }
   0x1   :  { %v28_v0 = vld [vmem:[%s777_s2 + $0x50] sm:$0xff]  ;;  %v29_v1 = vld [vmem:[%s777_s2 + $0x58] sm:$0xff]  ;;  %v30_v2 = vld [vmem:[%s777_s2 + $0x60] sm:$0xff]  ;;  %573 = vmatprep.subr.bf16.mxu1 %v639_v4  ;;  %570 = vmatprep.subr.bf16.mxu0 %v639_v4 }
   0x2   :  { %v574_v5 = vpack.c.bf16 %v29_v1, %v28_v0  ;;  %v31_v6 = vld [vmem:[%s777_s2 + $0x68] sm:$0xff]  ;;  %v18_v7 = vld [vmem:[%s777_s2] sm:$0xff]  ;;  %515 = vmatprep.mubr.msk.f32.mxu0 %vm640_vm0, %v641_v9  ;;  %534 = vmatprep.mubr.msk.f32.mxu1 %vm640_vm0, %v641_v9  ;;  %v115_v10 = vshrl.u32 %v114_v3, 7  ;;  %v32_v12 = vld [vmem:[%s777_s2 + $0x70] sm:$0xff] }
   0x3   :  { %v19_v8 = vld [vmem:[%s777_s2 + $0x8] sm:$0xff]  ;;  %v577_v11 = vpack.c.bf16 %v31_v6, %v30_v2  ;;  %v33_v14 = vld [vmem:[%s777_s2 + $0x78] sm:$0xff]  ;;  %v36_v15 = vld [vmem:[%s778_s3] sm:$0x1] }
   0x4   :  { %575 = vmatpush3.bf16.msra.mxu1 %v574_v5  ;;  %v571_v13 = vpack.c.bf16 %v19_v8, %v18_v7  ;;  %v116_v16 = vsub.s32 0, %v115_v10 }
   0x5   :  { %576 = vmatprep.subr.bf16.mxu1 %v639_v4 }
   0x6   :  { %9 = vsyncpa [#allocation3], 0  ;;  %572 = vmatpush3.bf16.msra.mxu0 %v571_v13  ;;  %v37_v17 = vld [vmem:[%s775_s0] sm:$0x1]  ;;  %vm38_vm1 = vcmask 130048   ;;  %v705_v18 = vrot.slane %v36_v15, %v116_v16  ;;  %v580_v19 = vpack.c.bf16 %v33_v14, %v32_v12  ;;  %v35_v21 = vld [vmem:[%s777_s2 + $0x88] sm:$0xff] }
   0x7   :  { %585 = vmatprep.subr.bf16.mxu0 %v639_v4  ;;  %v34_v20 = vld [vmem:[%s777_s2 + $0x80] sm:$0xff]  ;;  %s642_s12 = smov 96   ;;  %vm121_vm2 = vcmask 523264   ;;  %v24_v24 = vld [vmem:[%s777_s2 + $0x30] sm:$0xff]  ;;  %v25_v25 = vld [vmem:[%s777_s2 + $0x38] sm:$0xff]  ;;  %vm200_vm3 = vcmask 261120  }
   0x8   :  { %578 = vmatpush3.bf16.msra.mxu1 %v577_v11  ;;  %118 = vrot.lane.b32.xlu0 %v705_v18, %s642_s12  ;;  %v583_v22 = vpack.c.bf16 %v35_v21, %v34_v20  ;;  %v112_v23 = vld [vmem:[%s776_s1] sm:$0xff]  ;;  %v586_v26 = vpack.c.bf16 %v25_v25, %v24_v24  ;;  %v27_v28 = vld [vmem:[%s777_s2 + $0x48] sm:$0xff]  ;;  %vm274_vm4 = vcmask 31744   ;;  %v20_v39 = vld [vmem:[%s777_s2 + $0x10] sm:$0xff]  ;;  %s643_s29 = smov 32   ;;  %s644_s30 = smov [#allocation2]  }
   0x9   :  { %579 = vmatprep.subr.bf16.mxu1 %v639_v4  ;;  %516 = vmatmul.mubr.msk.f32.vlgmr.msra.gmra.mrb[0].mxu0 %vm38_vm1, %v37_v17  ;;  %v26_v27 = vld [vmem:[%s777_s2 + $0x40] sm:$0xff]  ;;  %vm593_vm5 = vmpackc.low %vm274_vm4, %vm274_vm4  ;;  %v21_v40 = vld [vmem:[%s777_s2 + $0x18] sm:$0xff]  ;;  %s467_s5 = sshll.u32 %s644_s30, 4  ;;  %s468_s5 = int_to_ptr.vmem [resolvable:$true] %s467_s5 }
   0xa   :  { %545 = vmatprep.mubr.msk.f32.mxu0 %vm640_vm0, %v641_v9  ;;  %587 = vmatpush3.bf16.msra.mxu0 %v586_v26  ;;  %v589_v29 = vpack.c.bf16 %v27_v28, %v26_v27  ;;  %v600_v41 = vpack.c.bf16 %v21_v40, %v20_v39  ;;  %v22_v63 = vld [vmem:[%s777_s2 + $0x20] sm:$0xff]  ;;  %v23_v0 = vld [vmem:[%s777_s2 + $0x28] sm:$0xff]  ;;  %s615_s2 = scalar_lea.vmem %s468_s5, 128  ;;  %p620_p1 = scmp.lt.s32.totalorder %s468_s5, %s468_s5 }
   0xb   :  { %588 = vmatprep.subr.bf16.mxu0 %v639_v4  ;;  %v603_v1 = vpack.c.bf16 %v23_v0, %v22_v63  ;;  %384 = vrot.lane.b32.xlu1 %v705_v18, %s643_s29  ;;  %p616_p0 = scmp.ne.s32.totalorder %s468_s5, %s615_s2  ;;  %p621_p2 = scmp.lt.s32.totalorder %s615_s2, %s615_s2 }
   0xc   :  { %581 = vmatpush3.bf16.msra.mxu1 %v580_v19 }
   0xd   :  { %582 = vmatprep.subr.bf16.mxu1 %v639_v4  ;;  %p622_p3 = por %p621_p2, %p620_p1 }
   0xe   :  { %590 = vmatpush3.bf16.msra.mxu0 %v589_v29 }
   0xf   :  { %591 = vmatprep.subr.bf16.mxu0 %v639_v4  ;;  %p623_p4 = pnand %p622_p3, %p616_p0 }
  0x10   :  { %584 = vmatpush3.bf16.msra.mxu1 %v583_v22 }
  0x11   :  { %599 = vmatprep.subr.bf16.mxu1 %v639_v4 }
  0x13   :  { %535 = vmatmul.mubr.msk.f32.vlgmr.msra.gmra.mrb[0].mxu1 %vm121_vm2, %v112_v23 }
  0x14   :  { %567 = vmatprep.mubr.msk.f32.mxu1 %vm640_vm0, %v641_v9  ;;  %601 = vmatpush3.bf16.msra.mxu1 %v600_v41 }
  0x15   :  { %602 = vmatprep.subr.bf16.mxu1 %v639_v4 }
  0x18   :  { %604 = vmatpush3.bf16.msra.mxu1 %v603_v1 }
  0x7a   :  { %v119_v33 = vpop.permute.xlu0 %118 }
  0x7d   :  { %v385_v6 = vpop.permute.xlu1 %384 }
  0xdc   :  { %v108_v30 = vpop.f32.mrb[0].mxu0 }
  0xdd   :  { %v517_v31 = vpop.f32.mrb[1].mxu0  ;;  %v109_v32 = vadd.f32 %v108_v30, %v36_v15 }
  0xdf   :  { %v198_v34 = vrot.slane %v109_v32, %v116_v16 }
  0xe6   :  { %v191_v35 = vpop.f32.mrb[0].mxu1 }
  0xe7   :  { %v192_v36 = vadd.f32 %v191_v35, %v119_v33  ;;  %v536_v37 = vpop.f32.mrb[1].mxu1 }
  0xe9   :  { %v199_v38 = vmul.f32 %v198_v34, %v192_v36  ;;  %380 = vrot.lane.b32.xlu0 %v192_v36, %s642_s12 }
  0xeb   :  { %546 = vmatmul.mubr.msk.f32.vlgmr.msra.gmra.mrb[2].mxu0 %vm200_vm3, %v199_v38 }
  0xec   :  { %556 = vmatprep.mubr.msk.f32.mxu0 %vm640_vm0, %v641_v9  ;;  %594 = vmatpush3.bf16.xpose.msk.msra.mxu0 %vm593_vm5, %v586_v26 }
  0xed   :  { %595 = vmatprep.subr.bf16.mxu0 %v639_v4 }
  0xf4   :  { %598 = vmatpush3.bf16.xpose.msk.msra.mxu0 %vm593_vm5, %v589_v29 }
 0x15b   :  { %v381_v2 = vpop.permute.xlu0 %380 }
 0x1be   :  { %v270_v42 = vpop.f32.mrb[2].mxu0 }
 0x1bf   :  { %v275_v43 = vsel %vm274_vm4, %v270_v42, -inf  ;;  %v547_v44 = vpop.f32.mrb[3].mxu0 }
 0x1c0   :  { %v276_v45 = vrot.slane %v275_v43, 4 }
 0x1c2   :  { %v277_v46 = vmax.f32 %v275_v43, %v276_v45 }
 0x1c4   :  { %v278_v47 = vrot.slane %v277_v46, 2 }
 0x1c6   :  { %v279_v48 = vmax.f32 %v277_v46, %v278_v47 }
 0x1c8   :  { %v280_v49 = vrot.slane %v279_v48, 1 }
 0x1ca   :  { %v281_v50 = vmax.f32 %v279_v48, %v280_v49 }
 0x1cc   :  { %v282_v51 = vsub.f32 %v270_v42, %v281_v50 }
 0x1ce   :  { %v283_v52 = vmul.f32 1.442695, %v282_v51 }
 0x1d0   :  { %611 = vpow2.f32 %v283_v52 }
 0x1da   :  { %v612_v53 = vpop.eup %611 }
 0x1db   :  { %v285_v54 = vsel %vm274_vm4, %v612_v53, 0.0 }
 0x1dc   :  { %v286_v55 = vrot.slane %v285_v54, 4 }
 0x1de   :  { %v287_v56 = vadd.f32 %v286_v55, %v285_v54 }
 0x1e0   :  { %v288_v57 = vrot.slane %v287_v56, 2 }
 0x1e2   :  { %v289_v58 = vadd.f32 %v288_v57, %v287_v56 }
 0x1e4   :  { %v290_v59 = vrot.slane %v289_v58, 1 }
 0x1e6   :  { %v291_v60 = vadd.f32 %v290_v59, %v289_v58 }
 0x1e8   :  { %613 = vrcp.f32 %v291_v60 }
 0x1f2   :  { %v614_v61 = vpop.eup %613 }
 0x1f3   :  { %v293_v62 = vmul.f32 %v614_v61, %v612_v53 }
 0x1f5   :  { %557 = vmatmul.mubr.msk.f32.vlgmr.msra.gmra.mrb[4].mxu0 %vm274_vm4, %v293_v62 }
 0x2c8   :  { %v375_v3 = vpop.f32.mrb[4].mxu0 }
 0x2c9   :  { %v383_v4 = vmul.f32 %v381_v2, %v375_v3  ;;  %v558_v5 = vpop.f32.mrb[5].mxu0 }
 0x2cb   :  { %568 = vmatmul.mubr.msk.f32.vlgmr.msra.gmra.mrb[2].mxu1 %vm200_vm3, %v383_v4 }
 0x39e   :  { %v456_v7 = vpop.f32.mrb[2].mxu1 }
 0x39f   :  { %v457_v8 = vadd.f32 %v456_v7, %v385_v6  ;;  %v569_v9 = vpop.f32.mrb[3].mxu1 }
 0x3a1   :  { %460 = vst.msk [vmem:[#allocation2] sm:$0xff] %vm200_vm3, %v457_v8 }
 0x3a2   :  { %626 = shalt.err (!%p623_p4)
}
 0x3a3   :  { %s627_s8 = scalar_lea.hbm %s779_s4, 128 }
 0x3a4   :  { %p628_p5 = scmp.ne.s32.totalorder %s779_s4, %s627_s8  ;;  %p631_p6 = scmp.lt.u32.totalorder %s627_s8, %s779_s4 }
 0x3a6   :  { %p633_p7 = pnand %p631_p6, %p628_p5 }
 0x3a8   :  { %636 = shalt.err (!%p633_p7)
}
 0x3a9   :  { %470 = dma.vmem_to_hbm [thread:$0]  %s468_s5, 128, %s779_s4, [#allocation3]  }
 0x3aa   :  { %637 = dma.done.wait [#allocation3], 128  }
 0x3ab   :  { %638 = vsyncadd [#allocation3], 4294967168 }
 0x3ac   :  { %474 = vsyncpa [#allocation3], 1 }

</bundles_post_ra>
